<compile_context>
chip_gen: v7x
topology: tpu7x:2x2x1
jax: 0.10.0
libtpu: 0.0.40
codegen_flags: <defaults>
</compile_context>

<pallas_src>
import functools

import jax
import jax.numpy as jnp
from jax.experimental import pallas as pl
from jax.experimental.pallas import tpu as pltpu


def _transe_kernel(h_ref, r_ref, t_ref, o_ref, *, d_total, tile_d, mask_d):
    """One (tile_n, tile_d) block: accumulate -sum((h+r-t)^2) into o_ref.

    o_ref is a lane-dense (1, tile_n) f32 block whose block index is constant
    along the D grid axis, so it stays resident in VMEM across the reduction
    and is written back to HBM once per N tile.
    """
    j = pl.program_id(1)  # D (reduction) axis, last in grid, "arbitrary"

    @pl.when(j == 0)
    def _init():
        o_ref[...] = jnp.zeros_like(o_ref)

    # Upcast to f32 in the VPU (required on v5e for bf16; compute has 4-10x
    # slack vs HBM here) and reduce in f32.
    h = h_ref[...].astype(jnp.float32)
    r = r_ref[...].astype(jnp.float32)
    t = t_ref[...].astype(jnp.float32)
    dist = h + r - t
    sq = dist * dist

    if mask_d:
        # Ragged last D-block: zero out the columns past the real embedding
        # dim so they do not contaminate the row sums.  (Ragged N rows need no
        # mask: the reduction is row-wise and junk rows are sliced off.)
        col = jax.lax.broadcasted_iota(jnp.int32, sq.shape, 1)
        sq = jnp.where(j * tile_d + col < d_total, sq, 0.0)

    # Row-wise reduce over lanes, then store as a lane-dense row (1, tile_n).
    o_ref[...] -= jnp.sum(sq, axis=1)[None, :]


def _choose_tiles(n, d, itemsize):
    """Pick (tile_n, tile_d) for the streaming pipeline.

    Goals:
      * ~24 MiB of double-buffered inputs per grid step (3 inputs x 2 buffers)
        -> amortizes the ~0.35 us/step pipeline overhead; we request a 32 MiB
        scoped-VMEM limit so this is safe on v5e/v6e/v7x.
      * >= 2 (ideally >= 8) N-steps for mid/large N so the "parallel" axis can
        be split across v7x's two TensorCores.
      * tile_n a multiple of 128 (lane-dense output rows; superset of 8/16/32
        sublane packing) unless it equals the full N.
      * Only tile D when a >= 512-row block with the full D cannot fit the
        budget (rare for TransE-sized embeddings).
    """
    budget = 24 * 1024 * 1024
    bytes_per_row_full_d = 3 * 2 * d * itemsize  # 3 inputs x double buffer
    rows_full_d = max(1, budget // bytes_per_row_full_d)

    min_rows = 512
    if rows_full_d >= min(min_rows, n):
        # Common path: no D tiling, full embedding dim per block.
        tile_n = min(rows_full_d, max(1024, -(-n // 8)))
        if tile_n >= n:
            return n, d                      # single full block (always legal)
        tile_n = max(128, (tile_n // 128) * 128)
        if tile_n >= n:
            return n, d
        return tile_n, d

    # Large-D fallback: keep tile_n healthy and tile the embedding dim.
    tile_n = min(min_rows, n)
    if tile_n < n:
        tile_n = max(128, (tile_n // 128) * 128)
    tile_d = budget // (3 * 2 * tile_n * itemsize)
    tile_d = max(128, (tile_d // 128) * 128)
    tile_d = min(tile_d, d)
    return tile_n, tile_d


def transe_forward(head, relation, tail, *, tile_n=None, tile_d=None):
    """head/relation/tail: (1, N, D) arrays (matching the PyTorch module's
    head[0] indexing).  Any float dtype (f32/bf16) is streamed as-is from HBM.
    Returns an (N,) f32 array of -sum(square(h + r - t), axis=1).

    tile_n / tile_d are test hooks to force a specific tiling.
    """
    h = head[0]
    r = relation[0]
    t = tail[0]
    n, d = h.shape
    itemsize = jnp.dtype(h.dtype).itemsize

    auto_tn, auto_td = _choose_tiles(n, d, itemsize)
    tile_n = auto_tn if tile_n is None else int(tile_n)
    tile_d = auto_td if tile_d is None else int(tile_d)
    tile_n = min(tile_n, n) if tile_n >= n else tile_n   # full-dim block is legal
    tile_d = min(tile_d, d) if tile_d >= d else tile_d

    num_n = -(-n // tile_n)
    num_d = -(-d // tile_d)
    mask_d = (num_d > 1) and (d % tile_d != 0)

    kernel = functools.partial(
        _transe_kernel, d_total=d, tile_d=tile_d, mask_d=mask_d)

    out = pl.pallas_call(
        kernel,
        # Lane-dense output: one (1, tile_n) row per N tile; fully divisible,
        # so no ragged output blocks.  Extra rows are sliced off below.
        out_shape=jax.ShapeDtypeStruct((num_n, tile_n), jnp.float32),
        grid_spec=pltpu.PrefetchScalarGridSpec(
            num_scalar_prefetch=0,
            grid=(num_n, num_d),
            in_specs=[
                pl.BlockSpec((tile_n, tile_d), lambda i, j: (i, j)),
                pl.BlockSpec((tile_n, tile_d), lambda i, j: (i, j)),
                pl.BlockSpec((tile_n, tile_d), lambda i, j: (i, j)),
            ],
            # Constant block index along j -> output block stays resident in
            # VMEM across the D reduction (accumulator pattern).
            out_specs=pl.BlockSpec((1, tile_n), lambda i, j: (i, 0)),
        ),
        compiler_params=pltpu.CompilerParams(
            # N axis independent per tile -> shardable across TensorCores
            # (2x on v7x); D axis is the reduction -> "arbitrary", last.
            dimension_semantics=("parallel", "arbitrary"),
            # Explicit limit: needed on v5e (16 MiB scoped default) for the
            # ~24 MiB double-buffered inputs; safe within v7x's 64 MiB VMEM.
            vmem_limit_bytes=32 * 1024 * 1024,
        ),
    )(h, r, t)

    return out.reshape(-1)[:n]


if __name__ == "__main__":
    key = jax.random.PRNGKey(0)
    k1, k2, k3, k4, k5, k6 = jax.random.split(key, 6)

    # Case 1: small f32 problem -> single full-block path.
    N, D = 8, 32
    head = jax.random.normal(k1, (1, N, D), dtype=jnp.float32)
    relation = jax.random.normal(k2, (1, N, D), dtype=jnp.float32)
    tail = jax.random.normal(k3, (1, N, D), dtype=jnp.float32)

    score = transe_forward(head, relation, tail)
    jax.block_until_ready(score)
    ref = -jnp.sum(jnp.square(head[0] + relation[0] - tail[0]), axis=1)
    assert score.shape == (N,)
    assert jnp.allclose(score, ref, atol=1e-5, rtol=1e-5), "f32 mismatch"

    # Case 2: bf16 storage with forced small tiles -> exercises the ragged
    # last N-block, the D-tiling accumulator, and the masked ragged D-block.
    N2, D2 = 40, 160
    hb = jax.random.normal(k4, (1, N2, D2), dtype=jnp.float32).astype(jnp.bfloat16)
    rb = jax.random.normal(k5, (1, N2, D2), dtype=jnp.float32).astype(jnp.bfloat16)
    tb = jax.random.normal(k6, (1, N2, D2), dtype=jnp.float32).astype(jnp.bfloat16)

    score_b = transe_forward(hb, rb, tb, tile_n=16, tile_d=128)
    jax.block_until_ready(score_b)
    dist_b = (hb[0].astype(jnp.float32) + rb[0].astype(jnp.float32)
              - tb[0].astype(jnp.float32))
    ref_b = -jnp.sum(jnp.square(dist_b), axis=1)
    assert score_b.shape == (N2,)
    assert jnp.allclose(score_b, ref_b, atol=1e-3, rtol=1e-3), "bf16 mismatch"

    # TODO(synk): TransE.lookup (torch.index_select) is not part of forward();
    # it remains a plain JAX gather outside this kernel.
    print("KERNEL_OK")
</pallas_src>

<mosaic_0001>
module attributes {stable_mosaic.version = 11 : i64} {
  func.func @_transe_kernel(%arg0: i32, %arg1: i32, %arg2: memref<8x32xf32, #tpu.memory_space<vmem>>, %arg3: memref<8x32xf32, #tpu.memory_space<vmem>>, %arg4: memref<8x32xf32, #tpu.memory_space<vmem>>, %arg5: memref<1x8xf32, #tpu.memory_space<vmem>>) attributes {dimension_semantics = [#tpu.dimension_semantics<parallel>, #tpu.dimension_semantics<arbitrary>], iteration_bounds = array<i64: 1, 1>, scalar_prefetch = 0 : i64, scratch_operands = 0 : i64, tpu.core_type = #tpu.core_type<tc>, window_params = [{transform_indices = @transform_0, window_bounds = array<i64: 8, 32>}, {transform_indices = @transform_1, window_bounds = array<i64: 8, 32>}, {transform_indices = @transform_2, window_bounds = array<i64: 8, 32>}, {transform_indices = @transform_3, window_bounds = array<i64: 1, 8>}]} {
    %c0_i32 = arith.constant 0 : i32
    %0 = arith.cmpi eq, %arg1, %c0_i32 : i32
    %1 = arith.extui %0 : i1 to i32
    %c0_i32_0 = arith.constant 0 : i32
    %2 = arith.cmpi ne, %1, %c0_i32_0 : i32
    scf.if %2 {
      %cst_10 = arith.constant 0.000000e+00 : f32
      %14 = vector.broadcast %cst_10 : f32 to vector<1x8xf32>
      %c0_11 = arith.constant 0 : index
      %c0_12 = arith.constant 0 : index
      %15 = vector.load %arg5[%c0_11, %c0_12] : memref<1x8xf32, #tpu.memory_space<vmem>>, vector<1x8xf32>
      tpu.vector_store %arg5[%c0_11, %c0_12], %14 {strides = array<i32>} : memref<1x8xf32, #tpu.memory_space<vmem>>, vector<1x8xf32>,
    } else {
    }
    %c0 = arith.constant 0 : index
    %c0_1 = arith.constant 0 : index
    %3 = vector.load %arg2[%c0, %c0_1] : memref<8x32xf32, #tpu.memory_space<vmem>>, vector<8x32xf32>
    %c0_2 = arith.constant 0 : index
    %c0_3 = arith.constant 0 : index
    %4 = vector.load %arg3[%c0_2, %c0_3] : memref<8x32xf32, #tpu.memory_space<vmem>>, vector<8x32xf32>
    %c0_4 = arith.constant 0 : index
    %c0_5 = arith.constant 0 : index
    %5 = vector.load %arg4[%c0_4, %c0_5] : memref<8x32xf32, #tpu.memory_space<vmem>>, vector<8x32xf32>
    %6 = arith.addf %3, %4 : vector<8x32xf32>
    %7 = arith.subf %6, %5 : vector<8x32xf32>
    %8 = arith.mulf %7, %7 : vector<8x32xf32>
    %c0_6 = arith.constant 0 : index
    %c0_7 = arith.constant 0 : index
    %9 = vector.load %arg5[%c0_6, %c0_7] : memref<1x8xf32, #tpu.memory_space<vmem>>, vector<1x8xf32>
    %cst = arith.constant dense<0.000000e+00> : vector<8xf32>
    %10 = vector.multi_reduction <add>, %8, %cst [1] : vector<8x32xf32> to vector<8xf32>
    %11 = vector.shape_cast %10 : vector<8xf32> to vector<1x8xf32>
    %12 = arith.subf %9, %11 : vector<1x8xf32>
    %c0_8 = arith.constant 0 : index
    %c0_9 = arith.constant 0 : index
    %13 = vector.load %arg5[%c0_8, %c0_9] : memref<1x8xf32, #tpu.memory_space<vmem>>, vector<1x8xf32>
    tpu.vector_store %arg5[%c0_8, %c0_9], %12 {strides = array<i32>} : memref<1x8xf32, #tpu.memory_space<vmem>>, vector<1x8xf32>,
    return
  }
  func.func @transform_0(%arg0: i32, %arg1: i32) -> (i32, i32) {
    %c0_i32 = arith.constant 0 : i32
    return %arg0, %arg1 : i32, i32
  }
  func.func @transform_1(%arg0: i32, %arg1: i32) -> (i32, i32) {
    %c0_i32 = arith.constant 0 : i32
    return %arg0, %arg1 : i32, i32
  }
  func.func @transform_2(%arg0: i32, %arg1: i32) -> (i32, i32) {
    %c0_i32 = arith.constant 0 : i32
    return %arg0, %arg1 : i32, i32
  }
  func.func @transform_3(%arg0: i32, %arg1: i32) -> (i32, i32) {
    %c0_i32 = arith.constant 0 : i32
    %c0_i32_0 = arith.constant 0 : i32
    return %arg0, %c0_i32 : i32, i32
  }
}

</mosaic_0001>

<bundles_post_ra>
// kernel: tpu_custom_call.1
= control target key start
LH: loop header
LB: loop body
LE: loop exit
PB: predicated region body
PF: predicated region fallthrough
CT: control target
= control target key end

     0   :  { %8 = vsyncpa [#allocation3], 0  ;;  %s371_s0 = inlined_call_operand.hbm [shape: f32[8,32], index: 0, kind: input, shape index: {}]   ;;  %s372_s1 = inlined_call_operand.hbm [shape: f32[8,32], index: 1, kind: input, shape index: {}]   ;;  %s373_s2 = inlined_call_operand.hbm [shape: f32[8,32], index: 2, kind: input, shape index: {}]   ;;  %s374_s3 = inlined_call_operand.hbm [shape: f32[1,8], index: 3, kind: output, shape index: {}]  }
   0x1   :  { %9 = vsyncpa [#allocation6], 0 }
   0x2   :  { %10 = vsyncpa [#allocation4], 0  ;;  %s294_s12 = smov [#allocation5]   ;;  %s295_s14 = smov [#allocation2]  }
   0x3   :  { %s27_s13 = sshll.u32 %s294_s12, 4  ;;  %s17_s15 = sshll.u32 %s295_s14, 4  ;;  %s28_s13 = int_to_ptr.vmem [resolvable:$true] %s27_s13  ;;  %s18_s15 = int_to_ptr.vmem [resolvable:$true] %s17_s15 }
   0x4   :  { %s200_s18 = scalar_lea.hbm %s372_s1, 128 }
   0x5   :  { %p201_p0 = scmp.ne.s32.totalorder %s372_s1, %s200_s18  ;;  %p204_p1 = scmp.lt.u32.totalorder %s200_s18, %s372_s1 }
   0x7   :  { %p206_p2 = pnand %p204_p1, %p201_p0 }
   0x9   :  { %209 = shalt.err (!%p206_p2)
}
   0xa   :  { %s210_s23 = scalar_lea.vmem %s28_s13, 128  ;;  %p215_p4 = scmp.lt.s32.totalorder %s28_s13, %s28_s13 }
   0xb   :  { %p211_p3 = scmp.ne.s32.totalorder %s28_s13, %s210_s23  ;;  %p216_p5 = scmp.lt.s32.totalorder %s210_s23, %s210_s23 }
   0xd   :  { %p217_p6 = por %p216_p5, %p215_p4 }
   0xf   :  { %p218_p7 = pnand %p217_p6, %p211_p3 }
  0x11   :  { %221 = shalt.err (!%p218_p7)
}
  0x12   :  { %30 = dma.hbm_to_vmem [thread:$0]  %s372_s1, 128, %s28_s13, [#allocation6]  }
  0x13   :  { %s222_s28 = scalar_lea.hbm %s371_s0, 128 }
  0x14   :  { %p223_p8 = scmp.ne.s32.totalorder %s371_s0, %s222_s28  ;;  %p226_p9 = scmp.lt.u32.totalorder %s222_s28, %s371_s0 }
  0x16   :  { %p228_p10 = pnand %p226_p9, %p223_p8 }
  0x18   :  { %231 = shalt.err (!%p228_p10)
}
  0x19   :  { %s232_s6 = scalar_lea.vmem %s18_s15, 128  ;;  %p237_p12 = scmp.lt.s32.totalorder %s18_s15, %s18_s15 }
  0x1a   :  { %p233_p11 = scmp.ne.s32.totalorder %s18_s15, %s232_s6  ;;  %p238_p13 = scmp.lt.s32.totalorder %s232_s6, %s232_s6 }
  0x1c   :  { %p239_p0 = por %p238_p13, %p237_p12 }
  0x1e   :  { %p240_p1 = pnand %p239_p0, %p233_p11 }
  0x20   :  { %243 = shalt.err (!%p240_p1)
}
  0x21   :  { %20 = dma.hbm_to_vmem [thread:$0]  %s371_s0, 128, %s18_s15, [#allocation3]  }
  0x22   :  { %s296_s8 = smov [#allocation7]   ;;  %s244_s12 = scalar_lea.hbm %s373_s2, 128 }
  0x23   :  { %s37_s9 = sshll.u32 %s296_s8, 4  ;;  %p245_p2 = scmp.ne.s32.totalorder %s373_s2, %s244_s12  ;;  %s38_s9 = int_to_ptr.vmem [resolvable:$true] %s37_s9 }
  0x24   :  { %p248_p3 = scmp.lt.u32.totalorder %s244_s12, %s373_s2 }
  0x26   :  { %p250_p4 = pnand %p248_p3, %p245_p2 }
  0x28   :  { %253 = shalt.err (!%p250_p4)
}
  0x29   :  { %s254_s18 = scalar_lea.vmem %s38_s9, 128  ;;  %p259_p6 = scmp.lt.s32.totalorder %s38_s9, %s38_s9 }
  0x2a   :  { %p255_p5 = scmp.ne.s32.totalorder %s38_s9, %s254_s18  ;;  %p260_p7 = scmp.lt.s32.totalorder %s254_s18, %s254_s18 }
  0x2c   :  { %p261_p8 = por %p260_p7, %p259_p6 }
  0x2e   :  { %p262_p9 = pnand %p261_p8, %p255_p5 }
  0x30   :  { %265 = shalt.err (!%p262_p9)
}
  0x31   :  { %40 = dma.hbm_to_vmem [thread:$0]  %s373_s2, 128, %s38_s9, [#allocation6]  }
  0x32   :  { %288 = dma.done.wait [#allocation3], 128  }
  0x33   :  { %289 = vsyncadd [#allocation3], 4294967168 }
  0x34   :  { %290 = dma.done.wait [#allocation6], 256  }
  0x35   :  { %291 = vsyncadd [#allocation6], 4294967040  ;;  %vm54_vm0 = vcmask 57344   ;;  %v297_v0 = vmov 0.0   ;;  %v56_v1 = vld [vmem:[#allocation2] sm:$0xff]  ;;  %v57_v2 = vld [vmem:[#allocation5] sm:$0xff]  ;;  %v68_v9 = vlaneseq }
  0x36   :  { %55 = vst.msk [vmem:[#allocation8] sm:$0x1] %vm54_vm0, %v297_v0  ;;  %v58_v3 = vld [vmem:[#allocation7] sm:$0xff]  ;;  %v59_v4 = vadd.f32 %v57_v2, %v56_v1  ;;  %vm63_vm1 = vcmask 261120   ;;  %v298_v8 = vmov 0   ;;  %s300_s2 = smov [#allocation8]  }
  0x37   :  { %199 = vset.pattern.permute.xlu0 %v298_v8  ;;  %v69_v10 = vshrl.u32 %v68_v9, 7  ;;  %v153_v11 = vand.u32 127, %v68_v9  ;;  %v299_v13 = vmov 1966171168   ;;  %s182_s19 = sshll.u32 %s300_s2, 4  ;;  %s183_s19 = int_to_ptr.vmem [resolvable:$true] %s182_s19 }
  0x38   :  { %v60_v5 = vsub.f32 %v59_v4, %v58_v3  ;;  %v105_v14 = vunpack.c.l.s4 %v299_v13  ;;  %s266_s20 = scalar_lea.vmem %s183_s19, 16  ;;  %s270_s21 = scalar_lea.vmem %s183_s19, 32 }
  0x39   :  { %v156_v12 = vsub.s32 %v153_v11, %v69_v10  ;;  %v70_v16 = vsub.s32 0, %v69_v10  ;;  %v74_v17 = vsub.s32 1, %v69_v10  ;;  %v78_v18 = vsub.s32 2, %v69_v10  ;;  %p267_p10 = scmp.ne.s32.totalorder %s183_s19, %s266_s20  ;;  %p271_p11 = scmp.lt.s32.totalorder %s183_s19, %s183_s19 }
  0x3a   :  { %v61_v6 = vmul.f32 %v60_v5, %v60_v5  ;;  %v106_v15 = vunpack.c.0.s8 %v105_v14  ;;  %v82_v19 = vsub.s32 3, %v69_v10  ;;  %v86_v20 = vsub.s32 4, %v69_v10  ;;  %p272_p12 = scmp.lt.s32.totalorder %s270_s21, %s266_s20 }
  0x3b   :  { %v90_v21 = vsub.s32 5, %v69_v10  ;;  %v94_v22 = vsub.s32 6, %v69_v10  ;;  %v98_v23 = vsub.s32 7, %v69_v10 }
  0x3c   :  { %v64_v7 = vsel %vm63_vm1, %v61_v6, 0.0  ;;  %v109_v25 = vsub.s32 %v106_v15, %v69_v10  ;;  %p273_p13 = por %p272_p12, %p271_p11 }
  0x3d   :  { %65 = vadd.xlane.f32.xlu0 %v64_v7  ;;  %v62_v50 = vld [vmem:[#allocation8] sm:$0x1] }
  0x3e   :  { %p274_p0 = pnand %p273_p13, %p267_p10 }
  0xca   :  { %v66_v24 = vpop.xlane.xlu0 %65 }
  0xcb   :  { %v71_v26 = vrot.slane %v66_v24, %v70_v16  ;;  %v75_v27 = vrot.slane %v66_v24, %v74_v17  ;;  %v79_v28 = vrot.slane %v66_v24, %v78_v18  ;;  %v83_v29 = vrot.slane %v66_v24, %v82_v19 }
  0xcc   :  { %v87_v30 = vrot.slane %v66_v24, %v86_v20  ;;  %v91_v31 = vrot.slane %v66_v24, %v90_v21  ;;  %v95_v32 = vrot.slane %v66_v24, %v94_v22  ;;  %v99_v33 = vrot.slane %v66_v24, %v98_v23 }
  0xcd   :  { %v100_v34 = vcombine.low %v71_v26, %v75_v27  ;;  %v101_v35 = vcombine.low %v79_v28, %v83_v29 }
  0xce   :  { %v102_v36 = vcombine.low %v87_v30, %v91_v31  ;;  %v103_v37 = vcombine.low %v95_v32, %v99_v33 }
  0xcf   :  { %v110_v38 = vrot.slane %v100_v34, %v109_v25  ;;  %v117_v39 = vrot.slane %v101_v35, %v109_v25 }
  0xd0   :  { %v124_v40 = vrot.slane %v102_v36, %v109_v25  ;;  %v131_v41 = vrot.slane %v103_v37, %v109_v25 }
  0xd1   :  { %v132_v42 = vcombine.low %v110_v38, %v117_v39 }
  0xd2   :  { %v133_v43 = vcombine.low %v124_v40, %v131_v41 }
  0xd3   :  { %v140_v44 = vrot.slane %v132_v42, %v109_v25 }
  0xd4   :  { %v147_v45 = vrot.slane %v133_v43, %v109_v25 }
  0xd6   :  { %v148_v46 = vcombine.low %v140_v44, %v147_v45 }
  0xd8   :  { %150 = vperm.xlu0 %199, %v148_v46  }
 0x157   :  { %v151_v47 = vpop.permute.xlu0 %150 }
 0x158   :  { %v157_v48 = vrot.slane %v151_v47, %v156_v12 }
 0x15a   :  { %v164_v49 = vrot.slane %v157_v48, %v109_v25 }
 0x15c   :  { %v171_v51 = vrot.slane %v164_v49, %v109_v25 }
 0x15e   :  { %v173_v52 = vsub.f32 %v62_v50, %v171_v51 }
 0x160   :  { %175 = vst.msk [vmem:[#allocation8] sm:$0x1] %vm54_vm0, %v173_v52 }
 0x161   :  { %277 = shalt.err (!%p274_p0)
}
 0x162   :  { %s278_s24 = scalar_lea.hbm %s374_s3, 16 }
 0x163   :  { %p279_p1 = scmp.ne.s32.totalorder %s374_s3, %s278_s24  ;;  %p282_p2 = scmp.lt.u32.totalorder %s278_s24, %s374_s3 }
 0x165   :  { %p284_p3 = pnand %p282_p2, %p279_p1 }
 0x167   :  { %287 = shalt.err (!%p284_p3)
}
 0x168   :  { %185 = dma.vmem_to_hbm [thread:$0]  %s183_s19, 16, %s374_s3, [#allocation4]  }
 0x169   :  { %292 = dma.done.wait [#allocation4], 16  }
 0x16a   :  { %293 = vsyncadd [#allocation4], 4294967280 }
 0x16b   :  { %189 = vsyncpa [#allocation3], 1 }
 0x16c   :  { %190 = vsyncpa [#allocation6], 1 }
 0x16d   :  { %191 = vsyncpa [#allocation4], 1 }

</bundles_post_ra>
